<compile_context>
chip_gen: v5e
topology: v5e:2x2
jax: 0.10.0
libtpu: 0.0.40
codegen_flags: <defaults>
</compile_context>

<pallas_src>
import jax
import jax.numpy as jnp
from jax.experimental import pallas as pl
from jax.experimental.pallas import tpu as pltpu

LANE = 128                       # class dim padded to one full lane width
ROW_PAD = 256                    # node dim padded to a multiple of this
VMEM_LIMIT = 64 * 1024 * 1024    # explicit scoped-VMEM limit (<= every gen's physical)
ONEHOT_RESIDENT_BUDGET = 8 * 1024 * 1024  # bytes for the double-buffered resident one-hot


# ---------------------------------------------------------------------------
# tile pickers (n is already padded to a multiple of ROW_PAD)
# ---------------------------------------------------------------------------
def _m_tile(n_pad):
    # Row tile: biggest tile dividing n_pad, capped at n_pad//2 so the "parallel"
    # row axis keeps >= 2 blocks (keeps both v7x TensorCores fed).
    cap = max(n_pad // 2, 128)
    for t in (1024, 512, 256, 128):
        if t <= cap and n_pad % t == 0:
            return t
    return n_pad


def _k_tile(n_pad):
    # Adjacency-column (reduction) tile: large, to amortize the ~0.35 us/step
    # pipeline overhead on the dominant memory-bound N^2 matmul.
    for t in (2048, 1024, 512, 256):
        if n_pad % t == 0:
            return t
    return n_pad


# ---------------------------------------------------------------------------
# in-kernel argmax -> one-hot (first-max tie-break, matches torch.max / jnp.argmax)
# ---------------------------------------------------------------------------
def _argmax_onehot(logits, num_classes, out_dtype):
    m, cp = logits.shape
    classes = jax.lax.broadcasted_iota(jnp.int32, (m, cp), 1)
    masked = jnp.where(classes < num_classes, logits, -jnp.inf)   # hide padded classes
    max_val = jnp.max(masked, axis=1, keepdims=True)
    is_max = masked >= max_val
    first_idx = jnp.min(jnp.where(is_max, classes, cp), axis=1, keepdims=True)
    return jnp.where(classes == first_idx, 1, 0).astype(out_dtype)


# ---------------------------------------------------------------------------
# Kernel 1: first MLP, with fused argmax/one-hot in the same pass
#   logits = relu(x @ W1^T) @ W2^T_padded ; onehot = one_hot(argmax(logits[:, :C]))
# ---------------------------------------------------------------------------
def _make_mlp0_kernel(num_classes):
    def kernel(x_ref, w1t_ref, w2t_ref, logits_ref, oh_ref):
        h = jnp.dot(x_ref[...], w1t_ref[...], preferred_element_type=jnp.float32)
        h = jnp.maximum(h, 0.0)                      # ReLU (dropout identity at eval)
        logits = jnp.dot(h, w2t_ref[...], preferred_element_type=jnp.float32)
        logits_ref[...] = logits
        oh_ref[...] = _argmax_onehot(logits, num_classes, oh_ref.dtype)
    return kernel


def mlp0_forward(x, w1t, w2t_pad, num_classes):
    """x: [N, F] -> (padded logits [N, LANE] f32, one-hot labels [N, LANE] bf16)."""
    n, f = x.shape
    hdim = w1t.shape[1]
    cp = w2t_pad.shape[1]
    tm = _m_tile(n)
    return pl.pallas_call(
        _make_mlp0_kernel(num_classes),
        out_shape=(jax.ShapeDtypeStruct((n, cp), jnp.float32),
                   jax.ShapeDtypeStruct((n, cp), jnp.bfloat16)),
        grid=(n // tm,),
        in_specs=[
            pl.BlockSpec((tm, f), lambda i: (i, 0)),
            pl.BlockSpec((f, hdim), lambda i: (0, 0)),     # weights resident in VMEM
            pl.BlockSpec((hdim, cp), lambda i: (0, 0)),
        ],
        out_specs=(pl.BlockSpec((tm, cp), lambda i: (i, 0)),
                   pl.BlockSpec((tm, cp), lambda i: (i, 0))),
        compiler_params=pltpu.CompilerParams(
            dimension_semantics=("parallel",),
            vmem_limit_bytes=VMEM_LIMIT),
    )(x, w1t, w2t_pad)


# ---------------------------------------------------------------------------
# Kernel 2 (fused per-iteration):
#   comm   = adj @ onehot              (k-tiled reduction, f32 VMEM accumulator)
#   hidden = sum_j feat_j @ W1_j + comm @ W1_last     (concat-free block dots)
#   logits = relu(hidden) @ W2^T_padded
#   onehot_next = one_hot(argmax(logits[:, :C]))      (fused, for the next iteration)
# outputs: (comm [N,LANE] bf16, logits [N,LANE] f32, onehot_next [N,LANE] bf16)
# ---------------------------------------------------------------------------
def _make_iter_kernel(nb_prev, num_classes, tk, resident_onehot):
    def kernel(*refs):
        adj_ref, oh_ref = refs[0], refs[1]
        feat_refs = refs[2:2 + nb_prev]
        w1s_ref = refs[2 + nb_prev]        # [nb_prev+1, LANE, H] stacked W1^T row blocks
        w2t_ref = refs[3 + nb_prev]        # [H, LANE]
        comm_ref = refs[4 + nb_prev]       # bf16 out (neighbour label counts)
        logits_ref = refs[5 + nb_prev]     # f32 out
        oh_out_ref = refs[6 + nb_prev]     # bf16 out (next iteration's one-hot)
        acc_ref = refs[7 + nb_prev]        # f32 VMEM scratch accumulator

        k = pl.program_id(1)

        @pl.when(k == 0)
        def _():
            acc_ref[...] = jnp.zeros_like(acc_ref)

        if resident_onehot:
            start = pl.multiple_of(k * tk, tk)
            oh = oh_ref[pl.ds(start, tk), :]
        else:
            oh = oh_ref[...]

        # int8 (0/1) adjacency upcast to bf16 in VMEM: exact, HBM stream is 1 B/entry.
        adj = adj_ref[...].astype(jnp.bfloat16)
        acc_ref[...] += jnp.dot(adj, oh, preferred_element_type=jnp.float32)

        @pl.when(k == pl.num_programs(1) - 1)
        def _():
            comm = acc_ref[...]
            comm_ref[...] = comm.astype(comm_ref.dtype)   # exact for counts <= 256
            # block-dot accumulation replaces the host-side feature concat
            h = jnp.dot(comm, w1s_ref[nb_prev], preferred_element_type=jnp.float32)
            for j in range(nb_prev):
                fj = feat_refs[j][...].astype(jnp.float32)
                h += jnp.dot(fj, w1s_ref[j], preferred_element_type=jnp.float32)
            h = jnp.maximum(h, 0.0)
            logits = jnp.dot(h, w2t_ref[...], preferred_element_type=jnp.float32)
            logits_ref[...] = logits
            oh_out_ref[...] = _argmax_onehot(logits, num_classes, oh_out_ref.dtype)
    return kernel


def mlp_iter_forward(adj_i8, onehot, feat_blocks, w1s, w2t_pad, num_classes):
    n = adj_i8.shape[0]
    cp = onehot.shape[1]
    hdim = w2t_pad.shape[0]
    nb = w1s.shape[0]
    nb_prev = nb - 1
    assert len(feat_blocks) == nb_prev

    tm = _m_tile(n)
    tk = _k_tile(n)
    gm, gk = n // tm, n // tk

    # keep the whole one-hot VMEM-resident when its double-buffered copy is small
    resident = (2 * n * cp * onehot.dtype.itemsize) <= ONEHOT_RESIDENT_BUDGET

    in_specs = [
        # adjacency: the only input whose block index changes every reduction step
        pl.BlockSpec((tm, tk), lambda i, k: (i, k), pipeline_mode=pl.Buffered(3)),
    ]
    if resident:
        in_specs.append(pl.BlockSpec((n, cp), lambda i, k: (0, 0)))
    else:
        in_specs.append(pl.BlockSpec((tk, cp), lambda i, k: (k, 0)))
    # previous feature blocks: block index constant in k -> fetched once per row tile
    in_specs += [pl.BlockSpec((tm, cp), lambda i, k: (i, 0)) for _ in range(nb_prev)]
    in_specs += [
        pl.BlockSpec((nb, cp, hdim), lambda i, k: (0, 0, 0)),  # stacked W1 row-blocks
        pl.BlockSpec((hdim, cp), lambda i, k: (0, 0)),         # padded W2^T
    ]
    out_specs = (
        pl.BlockSpec((tm, cp), lambda i, k: (i, 0)),   # comm   (bf16)
        pl.BlockSpec((tm, cp), lambda i, k: (i, 0)),   # logits (f32)
        pl.BlockSpec((tm, cp), lambda i, k: (i, 0)),   # next one-hot (bf16)
    )

    return pl.pallas_call(
        _make_iter_kernel(nb_prev, num_classes, tk, resident),
        out_shape=(jax.ShapeDtypeStruct((n, cp), jnp.bfloat16),
                   jax.ShapeDtypeStruct((n, cp), jnp.float32),
                   jax.ShapeDtypeStruct((n, cp), jnp.bfloat16)),
        grid=(gm, gk),
        in_specs=in_specs,
        out_specs=out_specs,
        scratch_shapes=[pltpu.VMEM((tm, cp), jnp.float32)],
        compiler_params=pltpu.CompilerParams(
            dimension_semantics=("parallel", "arbitrary"),
            vmem_limit_bytes=VMEM_LIMIT),
    )(adj_i8, onehot, *feat_blocks, w1s, w2t_pad)


# ---------------------------------------------------------------------------
# Parameter setup (PyTorch nn.Linear(bias=False) convention) + forward wrapper
# ---------------------------------------------------------------------------
def init_mlp_params(key, in_size, hidden_size, out_size):
    """U(-1/sqrt(fan_in), 1/sqrt(fan_in)); weights stored (out_features, in_features)."""
    k1, k2 = jax.random.split(key)
    b1 = 1.0 / jnp.sqrt(jnp.float32(in_size))
    w1 = jax.random.uniform(k1, (hidden_size, in_size), jnp.float32, -b1, b1)
    b2 = 1.0 / jnp.sqrt(jnp.float32(hidden_size))
    w2 = jax.random.uniform(k2, (out_size, hidden_size), jnp.float32, -b2, b2)
    return w1, w2


def prepare_params(params, num_classes, lane_pad=LANE):
    """Pre-transpose once and zero-pad the class dim to LANE (off the hot path)."""
    assert num_classes <= lane_pad, "num_classes must be <= 128 (LANE padding)"
    c, cp = num_classes, lane_pad
    w1_0, w2_0 = params[0]
    hid = w1_0.shape[0]
    w2t0 = jnp.zeros((hid, cp), jnp.float32).at[:, :c].set(w2_0.T)
    prepped = [(w1_0.T, w2t0)]
    for it in range(1, len(params)):
        w1, w2 = params[it]                    # w1: [H, 2*it*C], w2: [C, H]
        hid = w1.shape[0]
        nb = 2 * it
        w1t_blocks = w1.T.reshape(nb, c, hid)  # per-feature-block rows of W1^T
        w1s = jnp.zeros((nb, cp, hid), jnp.float32).at[:, :c, :].set(w1t_blocks)
        w2t = jnp.zeros((hid, cp), jnp.float32).at[:, :c].set(w2.T)
        prepped.append((w1s, w2t))
    return prepped


def multi_mlp_forward(prepped_params, x, adjacency, num_classes):
    """Inference path of MultiMLP.forward (labels=None, eps=0)."""
    assert num_classes <= LANE
    n = x.shape[0]
    n_pad = ((n + ROW_PAD - 1) // ROW_PAD) * ROW_PAD
    if n_pad != n:
        # zero rows in x and zero rows/cols in adjacency are inert: padded nodes have
        # zero features and zero degree, and never influence real nodes.
        x = jnp.pad(x, ((0, n_pad - n), (0, 0)))
        adjacency = jnp.pad(adjacency, ((0, n_pad - n), (0, n_pad - n)))
    adj_i8 = adjacency.astype(jnp.int8)       # exact for a 0/1 adjacency

    w1t0, w2t0 = prepped_params[0]
    logits, onehot = mlp0_forward(x, w1t0, w2t0, num_classes)
    feats = [logits]
    for it in range(1, len(prepped_params)):
        w1s, w2t = prepped_params[it]
        comm, logits, onehot = mlp_iter_forward(adj_i8, onehot, feats, w1s, w2t,
                                                num_classes)
        feats.append(comm)
        feats.append(logits)
    return logits[:n, :num_classes]           # drop row/class padding only at the end


# ---------------------------------------------------------------------------
if __name__ == "__main__":
    key = jax.random.PRNGKey(0)
    N, input_size, hidden_size, output_size, nl = 200, 32, 32, 8, 2

    keys = jax.random.split(key, nl + 3)
    x = jax.random.normal(keys[0], (N, input_size), jnp.float32)
    adj = (jax.random.uniform(keys[1], (N, N)) < 0.05).astype(jnp.float32)
    adj = jnp.maximum(adj, adj.T) * (1.0 - jnp.eye(N, dtype=jnp.float32))

    # build parameters exactly like MultiMLP.__init__
    params = []
    in_sz = input_size
    params.append(init_mlp_params(keys[2], in_sz, hidden_size, output_size))
    in_sz = 2 * output_size
    for it in range(1, nl + 1):
        params.append(init_mlp_params(keys[2 + it], in_sz, hidden_size, output_size))
        in_sz += 2 * output_size

    prepped = prepare_params(params, output_size)
    out = multi_mlp_forward(prepped, x, adj, output_size)
    out = jax.block_until_ready(out)
    assert out.shape == (N, output_size)

    # pure-JAX reference.  TPU f32 matmuls land between XLA's DEFAULT (bf16-pass) and
    # HIGHEST (multi-pass f32) precision, so accept a tight match to either variant.
    def run_ref(precision):
        def mlp(xx, w1, w2):
            h = jnp.maximum(jnp.dot(xx, w1.T, precision=precision), 0.0)
            return jnp.dot(h, w2.T, precision=precision)
        o = mlp(x, *params[0])
        ft = [o]
        for it in range(1, nl + 1):
            lab = jnp.argmax(o, axis=1)
            comm = jnp.dot(adj, jax.nn.one_hot(lab, output_size, dtype=jnp.float32),
                           precision=precision)
            ft.append(comm)
            o = mlp(jnp.concatenate(ft, axis=1), *params[it])
            ft.append(o)
        return o

    ok = False
    for prec in (jax.lax.Precision.HIGHEST, jax.lax.Precision.DEFAULT):
        ok = ok or bool(jnp.allclose(out, run_ref(prec), atol=5e-3, rtol=5e-3))
    assert ok, "mismatch vs reference"
    print("KERNEL_OK")
</pallas_src>

<mosaic_0001>
module attributes {stable_mosaic.version = 11 : i64} {
  func.func @kernel(%arg0: i32, %arg1: memref<128x32xf32, #tpu.memory_space<vmem>>, %arg2: memref<32x32xf32, #tpu.memory_space<vmem>>, %arg3: memref<32x128xf32, #tpu.memory_space<vmem>>, %arg4: memref<128x128xf32, #tpu.memory_space<vmem>>, %arg5: memref<128x128xbf16, #tpu.memory_space<vmem>>) attributes {dimension_semantics = [#tpu.dimension_semantics<parallel>], iteration_bounds = array<i64: 2>, scalar_prefetch = 0 : i64, scratch_operands = 0 : i64, tpu.core_type = #tpu.core_type<tc>, window_params = [{transform_indices = @transform_0, window_bounds = array<i64: 128, 32>}, {pipeline_mode = #tpu.pipeline_mode<synchronous>, transform_indices = @transform_1, window_bounds = array<i64: 32, 32>}, {pipeline_mode = #tpu.pipeline_mode<synchronous>, transform_indices = @transform_2, window_bounds = array<i64: 32, 128>}, {transform_indices = @transform_3, window_bounds = array<i64: 128, 128>}, {transform_indices = @transform_4, window_bounds = array<i64: 128, 128>}]} {
    %c0 = arith.constant 0 : index
    %c0_0 = arith.constant 0 : index
    %0 = vector.load %arg1[%c0, %c0_0] : memref<128x32xf32, #tpu.memory_space<vmem>>, vector<128x32xf32>
    %c0_1 = arith.constant 0 : index
    %c0_2 = arith.constant 0 : index
    %1 = vector.load %arg2[%c0_1, %c0_2] : memref<32x32xf32, #tpu.memory_space<vmem>>, vector<32x32xf32>
    %cst = arith.constant dense<0.000000e+00> : vector<128x32xf32>
    %2 = tpu.matmul %0, %1, %cst {dimension_numbers = #tpu.dot_dimension_numbers<[1], [0], [0], [1], [0, 0, 1, 1], [], []>} : vector<128x32xf32>, vector<32x32xf32>, vector<128x32xf32> -> vector<128x32xf32>
    %cst_3 = arith.constant 0.000000e+00 : f32
    %3 = vector.broadcast %cst_3 : f32 to vector<128x32xf32>
    %4 = arith.maximumf %2, %3 : vector<128x32xf32>
    %c0_4 = arith.constant 0 : index
    %c0_5 = arith.constant 0 : index
    %5 = vector.load %arg3[%c0_4, %c0_5] : memref<32x128xf32, #tpu.memory_space<vmem>>, vector<32x128xf32>
    %cst_6 = arith.constant dense<0.000000e+00> : vector<128x128xf32>
    %6 = tpu.matmul %4, %5, %cst_6 {dimension_numbers = #tpu.dot_dimension_numbers<[1], [0], [0], [1], [0, 0, 1, 1], [], []>} : vector<128x32xf32>, vector<32x128xf32>, vector<128x128xf32> -> vector<128x128xf32>
    %c0_7 = arith.constant 0 : index
    %c0_8 = arith.constant 0 : index
    %7 = vector.load %arg4[%c0_7, %c0_8] : memref<128x128xf32, #tpu.memory_space<vmem>>, vector<128x128xf32>
    tpu.vector_store %arg4[%c0_7, %c0_8], %6 {strides = array<i32>} : memref<128x128xf32, #tpu.memory_space<vmem>>, vector<128x128xf32>,
    %8 = tpu.iota {dimensions = array<i32: 1>} : vector<128x128xi32>
    %c8_i32 = arith.constant 8 : i32
    %9 = vector.broadcast %c8_i32 : i32 to vector<128x128xi32>
    %10 = arith.cmpi slt, %8, %9 : vector<128x128xi32>
    %cst_9 = arith.constant 0xFF800000 : f32
    %11 = vector.broadcast %cst_9 : f32 to vector<128x128xf32>
    %12 = arith.select %10, %6, %11 : vector<128x128xi1>, vector<128x128xf32>
    %cst_10 = arith.constant dense<0xFF800000> : vector<128xf32>
    %13 = vector.multi_reduction <maximumf>, %12, %cst_10 [1] : vector<128x128xf32> to vector<128xf32>
    %14 = vector.shape_cast %13 : vector<128xf32> to vector<128x1xf32>
    %15 = vector.broadcast %14 : vector<128x1xf32> to vector<128x128xf32>
    %16 = arith.cmpf oge, %12, %15 : vector<128x128xf32>
    %c128_i32 = arith.constant 128 : i32
    %17 = vector.broadcast %c128_i32 : i32 to vector<128x128xi32>
    %18 = arith.select %16, %8, %17 : vector<128x128xi1>, vector<128x128xi32>
    %cst_11 = arith.constant dense<2147483647> : vector<128xi32>
    %19 = vector.multi_reduction <minsi>, %18, %cst_11 [1] : vector<128x128xi32> to vector<128xi32>
    %20 = vector.shape_cast %19 : vector<128xi32> to vector<128x1xi32>
    %21 = vector.broadcast %20 : vector<128x1xi32> to vector<128x128xi32>
    %22 = arith.cmpi eq, %8, %21 : vector<128x128xi32>
    %c1_i32 = arith.constant 1 : i32
    %c0_i32 = arith.constant 0 : i32
    %23 = vector.broadcast %c1_i32 : i32 to vector<128x128xi32>
    %24 = vector.broadcast %c0_i32 : i32 to vector<128x128xi32>
    %25 = arith.select %22, %23, %24 : vector<128x128xi1>, vector<128x128xi32>
    %26 = arith.sitofp %25 : vector<128x128xi32> to vector<128x128xbf16>
    %c0_12 = arith.constant 0 : index
    %c0_13 = arith.constant 0 : index
    %27 = vector.load %arg5[%c0_12, %c0_13] : memref<128x128xbf16, #tpu.memory_space<vmem>>, vector<128x128xbf16>
    tpu.vector_store %arg5[%c0_12, %c0_13], %26 {strides = array<i32>} : memref<128x128xbf16, #tpu.memory_space<vmem>>, vector<128x128xbf16>,
    return
  }
  func.func @transform_0(%arg0: i32) -> (i32, i32) {
    %c0_i32 = arith.constant 0 : i32
    %c0_i32_0 = arith.constant 0 : i32
    return %arg0, %c0_i32 : i32, i32
  }
  func.func @transform_1(%arg0: i32) -> (i32, i32) {
    %c0_i32 = arith.constant 0 : i32
    %c0_i32_0 = arith.constant 0 : i32
    %c0_i32_1 = arith.constant 0 : i32
    return %c0_i32, %c0_i32_0 : i32, i32
  }
  func.func @transform_2(%arg0: i32) -> (i32, i32) {
    %c0_i32 = arith.constant 0 : i32
    %c0_i32_0 = arith.constant 0 : i32
    %c0_i32_1 = arith.constant 0 : i32
    return %c0_i32, %c0_i32_0 : i32, i32
  }
  func.func @transform_3(%arg0: i32) -> (i32, i32) {
    %c0_i32 = arith.constant 0 : i32
    %c0_i32_0 = arith.constant 0 : i32
    return %arg0, %c0_i32 : i32, i32
  }
  func.func @transform_4(%arg0: i32) -> (i32, i32) {
    %c0_i32 = arith.constant 0 : i32
    %c0_i32_0 = arith.constant 0 : i32
    return %arg0, %c0_i32 : i32, i32
  }
}

</mosaic_0001>

<bundles_post_ra>
// kernel: tpu_custom_call.1
= control target key start
LH: loop header
LB: loop body
LE: loop exit
PB: predicated region body
PF: predicated region fallthrough
CT: control target
= control target key end

     0   :  { %10 = vsyncpa [#allocation3], 0  ;;  %s1841_s0 = inlined_call_operand.vmem [shape: f32[256,32], index: 0, kind: input, shape index: {}]   ;;  %s1842_s1 = inlined_call_operand.vmem [shape: f32[32,32], index: 1, kind: input, shape index: {}]   ;;  %s1843_s2 = inlined_call_operand.vmem [shape: f32[32,128], index: 2, kind: input, shape index: {}]   ;;  %s1844_s3 = inlined_call_operand.hbm [shape: f32[256,128], index: 3, kind: output, shape index: {0}]   ;;  %s1845_s4 = inlined_call_operand.hbm [shape: bf16[256,128], index: 4, kind: output, shape index: {1}]  }
   0x1   :  { %12 = vsyncpa [#allocation3 + $0x1], 0 }
   0x2   :  { %13 = vsyncpa [#allocation5], 0 }
   0x3   :  { %15 = vsyncpa [#allocation5 + $0x1], 0  ;;  %s1294_s15 = smov 0   ;;  %s1296_s16 = smov 0  }
   0x4   :  { %s1298_s17 = smov 0   ;;  %s1300_s18 = smov 0  }
   0x5 LB: > { %s1315_s19 = sadd.s32 4294967295, %s1262_s18   ;;  %s1014_s20 = sadd.s32 4294967294, %s1262_s18   ;;  %s1262_s18 = sphi %s1300_s18, %s1851_s18   ;;  %s1258_s17 = sphi %s1298_s17, %s1850_s17   ;;  %s1254_s16 = sphi %s1296_s16, %s1849_s16   ;;  %s1250_s15 = sphi %s1294_s15, %s1848_s15  }
   0x6   : > { %s1319_s21 = sadd.s32 1, %s1262_s18   ;;  %s96_s22 = sadd.s32 1, %s1258_s17 }
   0x7   : > { %s93_s23 = ssub.s32 %s1262_s18, %s1319_s21  ;;  %p106_p0 = scmp.ne.s32.totalorder %s1258_s17, %s1254_s16 }
   0x8   : > { %p94_p1 = scmp.eq.s32.totalorder %s93_s23, 0  ;;  %p107_p2 = scmp.eq.s32.totalorder %s1315_s19, 1 }
   0x9   : > { %p112_p3 = scmp.ne.s32.totalorder %s1254_s16, %s1250_s15  ;;  %p113_p4 = scmp.eq.s32.totalorder %s1014_s20, 1 }
   0xa   : > { %s1330_s24 = scalar_select %p94_p1, %s1258_s17, %s96_s22  }
   0xb   : > { %p1332_p5 = por %p107_p2, %p106_p0  ;;  %p1336_p6 = por %p113_p4, %p112_p3 }
   0xc   : > { %p1017_p7 = scmp.ge.s32.totalorder %s1262_s18, 1  ;;  %p172_p8 = scmp.lt.s32.totalorder %s1262_s18, 3 }
   0xe   : > { %p173_p9 = pnand %p1017_p7, %p172_p8 }
   0xf   : > { %s1020_s5 = sshll.u32 (!%p173_p9), %s1315_s19, 4  ;;  %s1078_s8 = sshll.u32 (!%p173_p9), %s1315_s19, 7 }
  0x10   : > { %176 = sbr.rel (%p173_p9) target bundleno = 722 (0x2d2), region = 32  ;;  %p204_p10 = scmp.lt.s32.totalorder (!%p173_p9), %s1020_s5, 31 }
  0x11   : > { %s898_s11 = scalar_lea.hbm (!%p173_p9), %s1844_s3, %s1078_s8  ;;  %s1188_s28 = scalar_lea.hbm (!%p173_p9), %s1844_s3, 256 }
  0x15   : > { %v230_v0 = vld [vmem:[%s1842_s1 + $0x18] sm:$0xff]  ;;  %v229_v1 = vld [vmem:[%s1842_s1 + $0x10] sm:$0xff]  ;;  %v228_v2 = vld [vmem:[%s1842_s1 + $0x8] sm:$0xff]  ;;  %s1853_s5 = smov (!%p204_p10, %s1020_s5), 31  ;;  %vm231_vm0 = vcmask 261120   ;;  %v494_v56 = vlaneseq }
  0x16   : > { %292 = vmatpush.msra.mxu0 %v230_v0  ;;  %1111 = vmatpush.msra.mxu2 %v230_v0  ;;  %v227_v3 = vld [vmem:[%s1842_s1] sm:$0xff]  ;;  %s1021_s10 = sshll.u32 %s1853_s5, 3  ;;  %v364_v12 = vld [vmem:[%s1843_s2 + $0x18] sm:$0xff]  ;;  %v363_v13 = vld [vmem:[%s1843_s2 + $0x10] sm:$0xff]  ;;  %s1421_s5 = sand.u32 1, %s1254_s16  }
  0x17   : > { %s1358_s13 = scalar_lea.vmem %s1841_s0, %s1021_s10  ;;  %425 = vmatpush.msra.mxu1 %v364_v12  ;;  %1115 = vmatpush.msra.mxu3 %v364_v12  ;;  %v362_v22 = vld [vmem:[%s1843_s2 + $0x8] sm:$0xff]  ;;  %v361_v23 = vld [vmem:[%s1843_s2] sm:$0xff]  ;;  %v1423_v57 = vand.u32 127, %v494_v56  ;;  %s1018_s6 = sshll.u32 %s1421_s5, 7 }
  0x18   : > { %293 = vmatpush.msra.mxu0 %v229_v1  ;;  %1112 = vmatpush.msra.mxu2 %v229_v1  ;;  %v211_v4 = vld [vmem:[%s1358_s13] sm:$0xff]  ;;  %v212_v6 = vld [vmem:[%s1358_s13 + $0x8] sm:$0xff]  ;;  %v213_v8 = vld [vmem:[%s1358_s13 + $0x10] sm:$0xff]  ;;  %s1427_s7 = scalar_lea.vmem [#allocation2], %s1018_s6  ;;  %s882_s14 = scalar_lea.sflag [#allocation3], %s1421_s5 }
  0x19   : > { %v219_v5 = vld [vmem:[%s1358_s13 + $0x40] sm:$0xff]  ;;  %v220_v7 = vld [vmem:[%s1358_s13 + $0x48] sm:$0xff]  ;;  %v221_v9 = vld [vmem:[%s1358_s13 + $0x50] sm:$0xff]  ;;  %426 = vmatpush.msra.mxu1 %v363_v13  ;;  %1116 = vmatpush.msra.mxu3 %v363_v13  ;;  %vm496_vm1 = vcmp.lt.s32.totalorder %v1423_v57, 8  ;;  %s899_s12 = sshll.u32 %s1427_s7, 4  ;;  %s900_s12 = int_to_ptr.vmem [resolvable:$true] %s899_s12 }
  0x1a   : > { %294 = vmatpush.msra.mxu0 %v228_v2  ;;  %1113 = vmatpush.msra.mxu2 %v228_v2  ;;  %v214_v10 = vld [vmem:[%s1358_s13 + $0x18] sm:$0xff]  ;;  %v215_v14 = vld [vmem:[%s1358_s13 + $0x20] sm:$0xff]  ;;  %v224_v16 = vld [vmem:[%s1358_s13 + $0x68] sm:$0xff] }
  0x1b   : > { %v222_v11 = vld [vmem:[%s1358_s13 + $0x58] sm:$0xff]  ;;  %v223_v15 = vld [vmem:[%s1358_s13 + $0x60] sm:$0xff]  ;;  %v216_v17 = vld [vmem:[%s1358_s13 + $0x28] sm:$0xff]  ;;  %427 = vmatpush.msra.mxu1 %v362_v22  ;;  %1117 = vmatpush.msra.mxu3 %v362_v22 }
  0x1c   : > { %295 = vmatpush.msra.mxu0 %v227_v3  ;;  %1114 = vmatpush.msra.mxu2 %v227_v3  ;;  %v225_v18 = vld [vmem:[%s1358_s13 + $0x70] sm:$0xff]  ;;  %v226_v20 = vld [vmem:[%s1358_s13 + $0x78] sm:$0xff] }
  0x1d   : > { %1022 = vmatmul.msk.f32.vlgmr.msra.gmra.mxu0 %vm231_vm0, %v211_v4  ;;  %1030 = vmatmul.msk.f32.vlgmr.msra.gmra.mxu2 %vm231_vm0, %v219_v5  ;;  %v217_v19 = vld [vmem:[%s1358_s13 + $0x30] sm:$0xff]  ;;  %v218_v21 = vld [vmem:[%s1358_s13 + $0x38] sm:$0xff]  ;;  %s901_s13 = sshll.u32 %s898_s11, 4  ;;  %s902_s13 = int_to_ptr.hbm [resolvable:$true] %s901_s13 }
  0x1e   : > { %428 = vmatpush.msra.mxu1 %v361_v23  ;;  %1118 = vmatpush.msra.mxu3 %v361_v23  ;;  %s1182_s20 = sshra.s32 %s902_s13, 4  ;;  %s1183_s20 = int_to_ptr.hbm [resolvable:$true] %s1182_s20 }
  0x1f   : > { %s1184_s22 = scalar_lea.hbm %s1183_s20, 128  ;;  %p1189_p0 = scmp.lt.s32.totalorder %s1183_s20, %s1844_s3 }
  0x20   : > { %p1185_p11 = scmp.ne.s32.totalorder %s1183_s20, %s1184_s22  ;;  %p1190_p1 = scmp.lt.s32.totalorder %s1188_s28, %s1184_s22 }
  0x22   : > { %p1186_p12 = pnand %p1185_p11, %p1332_p5  ;;  %p1191_p2 = por %p1190_p1, %p1189_p0 }
  0x24   : > { %p1187_p13 = pneg %p1186_p12 }
  0x25   : > { %1023 = vmatmul.msk.f32.gmra.mxu0 %vm231_vm0, %v212_v6  ;;  %1031 = vmatmul.msk.f32.gmra.mxu2 %vm231_vm0, %v220_v7 }
  0x26   : > { %p1192_p3 = pnand %p1191_p2, %p1187_p13 }
  0x2d   : > { %1024 = vmatmul.msk.f32.gmra.mxu0 %vm231_vm0, %v213_v8  ;;  %1032 = vmatmul.msk.f32.gmra.mxu2 %vm231_vm0, %v221_v9 }
  0x35   : > { %1025 = vmatmul.msk.f32.gmra.mxu0 %vm231_vm0, %v214_v10  ;;  %1033 = vmatmul.msk.f32.gmra.mxu2 %vm231_vm0, %v222_v11 }
  0x3d   : > { %1026 = vmatmul.msk.f32.gmra.mxu0 %vm231_vm0, %v215_v14  ;;  %1034 = vmatmul.msk.f32.gmra.mxu2 %vm231_vm0, %v223_v15 }
  0x45   : > { %1035 = vmatmul.msk.f32.gmra.mxu2 %vm231_vm0, %v224_v16  ;;  %1027 = vmatmul.msk.f32.gmra.mxu0 %vm231_vm0, %v216_v17 }
  0x4d   : > { %1036 = vmatmul.msk.f32.gmra.mxu2 %vm231_vm0, %v225_v18  ;;  %1028 = vmatmul.msk.f32.gmra.mxu0 %vm231_vm0, %v217_v19 }
  0x55   : > { %1037 = vmatmul.msk.f32.gmra.mxu2 %vm231_vm0, %v226_v20  ;;  %1029 = vmatmul.msk.f32.gmra.mxu0 %vm231_vm0, %v218_v21 }
  0x9a   : > { %v297_v24 = vpop.f32.mrf.mxu0 }
  0x9b   : > { %v345_v25 = vmax.f32 %v297_v24, 0.0 }
  0x9d   : > { %1038 = vmatmul.msk.f32.vlgmr.msra.gmra.mxu1 %vm231_vm0, %v345_v25 }
  0xa0   : > { %v321_v26 = vpop.f32.mrf.mxu2 }
  0xa1   : > { %v353_v27 = vmax.f32 %v321_v26, 0.0 }
  0xa2   : > { %v300_v28 = vpop.f32.mrf.mxu0 }
  0xa3   : > { %v346_v29 = vmax.f32 %v300_v28, 0.0  ;;  %1046 = vmatmul.msk.f32.vlgmr.msra.gmra.mxu3 %vm231_vm0, %v353_v27 }
  0xa5   : > { %1039 = vmatmul.msk.f32.gmra.mxu1 %vm231_vm0, %v346_v29 }
  0xa8   : > { %v324_v30 = vpop.f32.mrf.mxu2 }
  0xa9   : > { %v354_v31 = vmax.f32 %v324_v30, 0.0 }
  0xaa   : > { %v303_v32 = vpop.f32.mrf.mxu0 }
  0xab   : > { %v347_v33 = vmax.f32 %v303_v32, 0.0  ;;  %1047 = vmatmul.msk.f32.gmra.mxu3 %vm231_vm0, %v354_v31 }
  0xad   : > { %1040 = vmatmul.msk.f32.gmra.mxu1 %vm231_vm0, %v347_v33 }
  0xb0   : > { %v327_v34 = vpop.f32.mrf.mxu2 }
  0xb1   : > { %v355_v35 = vmax.f32 %v327_v34, 0.0 }
  0xb2   : > { %v306_v36 = vpop.f32.mrf.mxu0 }
  0xb3   : > { %v348_v37 = vmax.f32 %v306_v36, 0.0  ;;  %1048 = vmatmul.msk.f32.gmra.mxu3 %vm231_vm0, %v355_v35 }
  0xb5   : > { %1041 = vmatmul.msk.f32.gmra.mxu1 %vm231_vm0, %v348_v37 }
  0xb8   : > { %v330_v38 = vpop.f32.mrf.mxu2 }
  0xb9   : > { %v356_v39 = vmax.f32 %v330_v38, 0.0 }
  0xba   : > { %v309_v40 = vpop.f32.mrf.mxu0 }
  0xbb   : > { %v349_v41 = vmax.f32 %v309_v40, 0.0  ;;  %1049 = vmatmul.msk.f32.gmra.mxu3 %vm231_vm0, %v356_v39 }
  0xbd   : > { %1042 = vmatmul.msk.f32.gmra.mxu1 %vm231_vm0, %v349_v41 }
  0xc0   : > { %v333_v42 = vpop.f32.mrf.mxu2 }
  0xc1   : > { %v357_v43 = vmax.f32 %v333_v42, 0.0 }
  0xc2   : > { %v312_v44 = vpop.f32.mrf.mxu0 }
  0xc3   : > { %1050 = vmatmul.msk.f32.gmra.mxu3 %vm231_vm0, %v357_v43  ;;  %v350_v45 = vmax.f32 %v312_v44, 0.0 }
  0xc5   : > { %1043 = vmatmul.msk.f32.gmra.mxu1 %vm231_vm0, %v350_v45 }
  0xc8   : > { %v336_v46 = vpop.f32.mrf.mxu2 }
  0xc9   : > { %v358_v47 = vmax.f32 %v336_v46, 0.0 }
  0xca   : > { %v315_v48 = vpop.f32.mrf.mxu0 }
  0xcb   : > { %1051 = vmatmul.msk.f32.gmra.mxu3 %vm231_vm0, %v358_v47  ;;  %v351_v49 = vmax.f32 %v315_v48, 0.0 }
  0xcd   : > { %1044 = vmatmul.msk.f32.gmra.mxu1 %vm231_vm0, %v351_v49 }
  0xd0   : > { %v339_v50 = vpop.f32.mrf.mxu2 }
  0xd1   : > { %v359_v51 = vmax.f32 %v339_v50, 0.0 }
  0xd2   : > { %v318_v52 = vpop.f32.mrf.mxu0 }
  0xd3   : > { %1052 = vmatmul.msk.f32.gmra.mxu3 %vm231_vm0, %v359_v51  ;;  %v352_v53 = vmax.f32 %v318_v52, 0.0 }
  0xd5   : > { %1045 = vmatmul.msk.f32.gmra.mxu1 %vm231_vm0, %v352_v53 }
  0xd8   : > { %v342_v54 = vpop.f32.mrf.mxu2 }
  0xd9   : > { %v360_v55 = vmax.f32 %v342_v54, 0.0 }
  0xdb   : > { %1053 = vmatmul.msk.f32.gmra.mxu3 %vm231_vm0, %v360_v55 }
 0x11a   : > { %v430_v58 = vpop.f32.mrf.mxu1 }
 0x11b   : > { %478 = vst [vmem:[%s1427_s7] sm:$0xff] %v430_v58  ;;  %v1432_v59 = vsel %vm496_vm1, %v430_v58, -inf }
 0x11c   : > { %513 = vmax.xlane.f32.xlu0 %v1432_v59 }
 0x122   : > { %v433_v60 = vpop.f32.mrf.mxu1 }
 0x123   : > { %479 = vst [vmem:[%s1427_s7 + $0x8] sm:$0xff] %v433_v60  ;;  %v1438_v61 = vsel %vm496_vm1, %v433_v60, -inf }
 0x124   : > { %515 = vmax.xlane.f32.xlu0 %v1438_v61 }
 0x126   : > { %v454_v62 = vpop.f32.mrf.mxu3 }
 0x127   : > { %486 = vst [vmem:[%s1427_s7 + $0x40] sm:$0xff] %v454_v62  ;;  %v1444_v63 = vsel %vm496_vm1, %v454_v62, -inf }
 0x128   : > { %529 = vmax.xlane.f32.xlu2 %v1444_v63 }
 0x12a   : > { %v436_v0 = vpop.f32.mrf.mxu1 }
 0x12b   : > { %480 = vst [vmem:[%s1427_s7 + $0x10] sm:$0xff] %v436_v0  ;;  %v1450_v1 = vsel %vm496_vm1, %v436_v0, -inf }
 0x12c   : > { %517 = vmax.xlane.f32.xlu1 %v1450_v1 }
 0x12e   : > { %v457_v2 = vpop.f32.mrf.mxu3 }
 0x12f   : > { %487 = vst [vmem:[%s1427_s7 + $0x48] sm:$0xff] %v457_v2  ;;  %v1456_v3 = vsel %vm496_vm1, %v457_v2, -inf }
 0x130   : > { %531 = vmax.xlane.f32.xlu0 %v1456_v3 }
 0x132   : > { %v439_v4 = vpop.f32.mrf.mxu1 }
 0x133   : > { %481 = vst [vmem:[%s1427_s7 + $0x18] sm:$0xff] %v439_v4  ;;  %v1462_v5 = vsel %vm496_vm1, %v439_v4, -inf }
 0x134   : > { %519 = vmax.xlane.f32.xlu1 %v1462_v5 }
 0x136   : > { %v460_v6 = vpop.f32.mrf.mxu3 }
 0x137   : > { %488 = vst [vmem:[%s1427_s7 + $0x50] sm:$0xff] %v460_v6  ;;  %v1469_v8 = vsel %vm496_vm1, %v460_v6, -inf }
 0x13a   : > { %v442_v7 = vpop.f32.mrf.mxu1 }
 0x13b   : > { %482 = vst [vmem:[%s1427_s7 + $0x20] sm:$0xff] %v442_v7  ;;  %v1473_v9 = vsel %vm496_vm1, %v442_v7, -inf }
 0x13c   : > { %533 = vmax.xlane.f32.xlu1 %v1469_v8  ;;  %521 = vmax.xlane.f32.xlu2 %v1473_v9 }
 0x13e   : > { %v463_v10 = vpop.f32.mrf.mxu3 }
 0x13f   : > { %489 = vst [vmem:[%s1427_s7 + $0x58] sm:$0xff] %v463_v10  ;;  %v1480_v12 = vsel %vm496_vm1, %v463_v10, -inf }
 0x142   : > { %v445_v11 = vpop.f32.mrf.mxu1 }
 0x143   : > { %483 = vst [vmem:[%s1427_s7 + $0x28] sm:$0xff] %v445_v11  ;;  %v1492_v16 = vsel %vm496_vm1, %v445_v11, -inf }
 0x144   : > { %535 = vmax.xlane.f32.xlu2 %v1480_v12 }
 0x146   : > { %v466_v13 = vpop.f32.mrf.mxu3 }
 0x147   : > { %490 = vst [vmem:[%s1427_s7 + $0x60] sm:$0xff] %v466_v13  ;;  %v1487_v14 = vsel %vm496_vm1, %v466_v13, -inf }
 0x148   : > { %537 = vmax.xlane.f32.xlu0 %v1487_v14 }
 0x14a   : > { %v448_v15 = vpop.f32.mrf.mxu1 }
 0x14b   : > { %484 = vst [vmem:[%s1427_s7 + $0x30] sm:$0xff] %v448_v15  ;;  %v1498_v17 = vsel %vm496_vm1, %v448_v15, -inf }
 0x14c   : > { %523 = vmax.xlane.f32.xlu2 %v1492_v16 }
 0x14e   : > { %v469_v18 = vpop.f32.mrf.mxu3 }
 0x14f   : > { %491 = vst [vmem:[%s1427_s7 + $0x68] sm:$0xff] %v469_v18  ;;  %v1503_v19 = vsel %vm496_vm1, %v469_v18, -inf }
 0x150   : > { %539 = vmax.xlane.f32.xlu1 %v1503_v19  ;;  %525 = vmax.xlane.f32.xlu0 %v1498_v17 }
 0x152   : > { %v451_v20 = vpop.f32.mrf.mxu1 }
 0x153   : > { %485 = vst [vmem:[%s1427_s7 + $0x38] sm:$0xff] %v451_v20  ;;  %v1510_v21 = vsel %vm496_vm1, %v451_v20, -inf }
 0x156   : > { %v472_v22 = vpop.f32.mrf.mxu3 }
 0x157   : > { %492 = vst [vmem:[%s1427_s7 + $0x70] sm:$0xff] %v472_v22  ;;  %v1515_v23 = vsel %vm496_vm1, %v472_v22, -inf }
 0x158   : > { %541 = vmax.xlane.f32.xlu2 %v1515_v23  ;;  %527 = vmax.xlane.f32.xlu1 %v1510_v21 }
 0x15e   : > { %v475_v24 = vpop.f32.mrf.mxu3 }
 0x15f   : > { %493 = vst [vmem:[%s1427_s7 + $0x78] sm:$0xff] %v475_v24  ;;  %v1522_v25 = vsel %vm496_vm1, %v475_v24, -inf }
 0x160   : > { %543 = vmax.xlane.f32.xlu0 %v1522_v25 }
 0x18f   : > { %v514_v26 = vpop.xlane.xlu0 %513 }
 0x190   : > { %vm545_vm2 = vcmp.ge.f32.partialorder %v1432_v59, %v514_v26 }
 0x191   : > { %v1527_v27 = vsel %vm545_vm2, %v1423_v57, 128 }
 0x192   : > { %v578_v28 = vshra.s32 %v1527_v27, 16 }
 0x194   : > { %v1530_v29 = vcvt.s32.f32 %v578_v28 }
 0x196   : > { %581 = vmin.xlane.f32.xlu1 %v1530_v29 }
 0x197   : > { %v516_v30 = vpop.xlane.xlu0 %515 }
 0x198   : > { %vm546_vm3 = vcmp.ge.f32.partialorder %v1438_v61, %v516_v30  ;;  %v577_v30 = vand.u32 65535, %v1527_v27 }
 0x199   : > { %v1535_v31 = vsel %vm546_vm3, %v1423_v57, 128 }
 0x19a   : > { %v592_v32 = vshra.s32 %v1535_v31, 16 }
 0x19b   : > { %v530_v33 = vpop.xlane.xlu2 %529 }
 0x19c   : > { %vm553_vm4 = vcmp.ge.f32.partialorder %v1444_v63, %v530_v33  ;;  %v1539_v34 = vcvt.s32.f32 %v592_v32 }
 0x19d   : > { %v1542_v35 = vsel %vm553_vm4, %v1423_v57, 128 }
 0x19e   : > { %595 = vmin.xlane.f32.xlu0 %v1539_v34  ;;  %v690_v36 = vshra.s32 %v1542_v35, 16 }
 0x19f   : > { %v518_v37 = vpop.xlane.xlu1 %517 }
 0x1a0   : > { %vm547_vm5 = vcmp.ge.f32.partialorder %v1450_v1, %v518_v37  ;;  %v1547_v38 = vcvt.s32.f32 %v690_v36  ;;  %v591_v36 = vand.u32 65535, %v1535_v31  ;;  %v689_v37 = vand.u32 65535, %v1542_v35 }
 0x1a1   : > { %v1550_v39 = vsel %vm547_vm5, %v1423_v57, 128 }
 0x1a2   : > { %693 = vmin.xlane.f32.xlu1 %v1547_v38  ;;  %v606_v41 = vshra.s32 %v1550_v39, 16  ;;  %v605_v31 = vand.u32 65535, %v1550_v39 }
 0x1a3   : > { %v532_v40 = vpop.xlane.xlu0 %531 }
 0x1a4   : > { %vm554_vm6 = vcmp.ge.f32.partialorder %v1456_v3, %v532_v40  ;;  %v1562_v46 = vcvt.s32.f32 %v606_v41  ;;  %v593_v41 = vcvt.s32.f32 %v591_v36 }
 0x1a5   : > { %v1556_v42 = vsel %vm554_vm6, %v1423_v57, 128 }
 0x1a6   : > { %v704_v43 = vshra.s32 %v1556_v42, 16  ;;  %v703_v35 = vand.u32 65535, %v1556_v42 }
 0x1a7   : > { %v520_v44 = vpop.xlane.xlu1 %519 }
 0x1a8   : > { %vm548_vm7 = vcmp.ge.f32.partialorder %v1462_v5, %v520_v44  ;;  %v1560_v45 = vcvt.s32.f32 %v704_v43  ;;  %v691_v44 = vcvt.s32.f32 %v689_v37 }
 0x1a9   : > { %v1565_v47 = vsel %vm548_vm7, %v1423_v57, 128 }
 0x1aa   : > { %707 = vmin.xlane.f32.xlu2 %v1560_v45  ;;  %609 = vmin.xlane.f32.xlu1 %v1562_v46  ;;  %v620_v48 = vshra.s32 %v1565_v47, 16  ;;  %v619_v39 = vand.u32 65535, %v1565_v47 }
 0x1ac   : > { %v1571_v51 = vcvt.s32.f32 %v620_v48 }
 0x1af   : > { %v534_v49 = vpop.xlane.xlu1 %533  ;;  %v522_v50 = vpop.xlane.xlu2 %521 }
 0x1b0   : > { %vm555_vm8 = vcmp.ge.f32.partialorder %v1469_v8, %v534_v49  ;;  %vm549_vm9 = vcmp.ge.f32.partialorder %v1473_v9, %v522_v50  ;;  %v705_v50 = vcvt.s32.f32 %v703_v35 }
 0x1b1   : > { %v1574_v52 = vsel %vm555_vm8, %v1423_v57, 128  ;;  %v1582_v55 = vsel %vm549_vm9, %v1423_v57, 128 }
 0x1b2   : > { %623 = vmin.xlane.f32.xlu2 %v1571_v51  ;;  %v718_v53 = vshra.s32 %v1574_v52, 16  ;;  %v634_v58 = vshra.s32 %v1582_v55, 16  ;;  %v717_v42 = vand.u32 65535, %v1574_v52  ;;  %v633_v47 = vand.u32 65535, %v1582_v55 }
 0x1b4   : > { %v1579_v54 = vcvt.s32.f32 %v718_v53  ;;  %v1592_v62 = vcvt.s32.f32 %v634_v58  ;;  %v621_v58 = vcvt.s32.f32 %v619_v39 }
 0x1b6   : > { %721 = vmin.xlane.f32.xlu0 %v1579_v54 }
 0x1b7   : > { %v536_v56 = vpop.xlane.xlu2 %535 }
 0x1b8   : > { %vm556_vm10 = vcmp.ge.f32.partialorder %v1480_v12, %v536_v56 }
 0x1b9   : > { %v1588_v59 = vsel %vm556_vm10, %v1423_v57, 128 }
 0x1ba   : > { %v732_v60 = vshra.s32 %v1588_v59, 16  ;;  %v731_v52 = vand.u32 65535, %v1588_v59 }
 0x1bb   : > { %v538_v61 = vpop.xlane.xlu0 %537 }
 0x1bc   : > { %vm557_vm11 = vcmp.ge.f32.partialorder %v1487_v14, %v538_v61  ;;  %v1594_v63 = vcvt.s32.f32 %v732_v60  ;;  %v719_v61 = vcvt.s32.f32 %v717_v42 }
 0x1bd   : > { %v1597_v0 = vsel %vm557_vm11, %v1423_v57, 128 }
 0x1be   : > { %637 = vmin.xlane.f32.xlu0 %v1592_v62  ;;  %735 = vmin.xlane.f32.xlu1 %v1594_v63  ;;  %v746_v1 = vshra.s32 %v1597_v0, 16 }
 0x1bf   : > { %v524_v2 = vpop.xlane.xlu2 %523 }
 0x1c0   : > { %vm550_vm12 = vcmp.ge.f32.partialorder %v1492_v16, %v524_v2  ;;  %v1603_v3 = vcvt.s32.f32 %v746_v1  ;;  %v745_v1 = vand.u32 65535, %v1597_v0 }
 0x1c1   : > { %v1606_v4 = vsel %vm550_vm12, %v1423_v57, 128 }
 0x1c2   : > { %749 = vmin.xlane.f32.xlu2 %v1603_v3  ;;  %v648_v5 = vshra.s32 %v1606_v4, 16  ;;  %v647_v55 = vand.u32 65535, %v1606_v4  ;;  %v747_v0 = vcvt.s32.f32 %v745_v1 }
 0x1c3   : > { %v540_v6 = vpop.xlane.xlu1 %539  ;;  %v526_v7 = vpop.xlane.xlu0 %525 }
 0x1c4   : > { %vm551_vm13 = vcmp.ge.f32.partialorder %v1498_v17, %v526_v7  ;;  %v1611_v8 = vcvt.s32.f32 %v648_v5  ;;  %vm558_vm0 = vcmp.ge.f32.partialorder %v1503_v19, %v540_v6  ;;  %v733_v6 = vcvt.s32.f32 %v731_v52 }
 0x1c5   : > { %v1614_v9 = vsel %vm551_vm13, %v1423_v57, 128  ;;  %v1637_v22 = vsel %vm558_vm0, %v1423_v57, 128 }
 0x1c6   : > { %651 = vmin.xlane.f32.xlu1 %v1611_v8  ;;  %v662_v10 = vshra.s32 %v1614_v9, 16  ;;  %v760_v19 = vshra.s32 %v1637_v22, 16 }
 0x1c8   : > { %v1618_v11 = vcvt.s32.f32 %v662_v10  ;;  %v1649_v28 = vcvt.s32.f32 %v760_v19 }
 0x1ca   : > { %665 = vmin.xlane.f32.xlu2 %v1618_v11 }
 0x1cb   : > { %v542_v12 = vpop.xlane.xlu2 %541  ;;  %v528_v13 = vpop.xlane.xlu1 %527 }
 0x1cc   : > { %vm559_vm14 = vcmp.ge.f32.partialorder %v1515_v23, %v542_v12  ;;  %vm552_vm15 = vcmp.ge.f32.partialorder %v1510_v21, %v528_v13  ;;  %v661_v12 = vand.u32 65535, %v1614_v9  ;;  %v649_v13 = vcvt.s32.f32 %v647_v55 }
 0x1cd   : > { %v1624_v14 = vsel %vm559_vm14, %v1423_v57, 128  ;;  %v1627_v15 = vsel %vm552_vm15, %v1423_v57, 128 }
 0x1ce   : > { %v774_v16 = vshra.s32 %v1624_v14, 16  ;;  %v676_v17 = vshra.s32 %v1627_v15, 16  ;;  %v663_v4 = vcvt.s32.f32 %v661_v12  ;;  %v675_v9 = vand.u32 65535, %v1627_v15 }
 0x1d0   : > { %v1632_v18 = vcvt.s32.f32 %v774_v16  ;;  %v1634_v20 = vcvt.s32.f32 %v676_v17 }
 0x1d2   : > { %777 = vmin.xlane.f32.xlu1 %v1632_v18  ;;  %679 = vmin.xlane.f32.xlu0 %v1634_v20 }
 0x1d3   : > { %v544_v21 = vpop.xlane.xlu0 %543 }
 0x1d4   : > { %vm560_vm1 = vcmp.ge.f32.partialorder %v1522_v25, %v544_v21  ;;  %v579_v25 = vcvt.s32.f32 %v577_v30 }
 0x1d5   : > { %v1644_v23 = vsel %vm560_vm1, %v1423_v57, 128 }
 0x1d6   : > { %v788_v24 = vshra.s32 %v1644_v23, 16  ;;  %v787_v15 = vand.u32 65535, %v1644_v23 }
 0x1d8   : > { %v1647_v26 = vcvt.s32.f32 %v788_v24 }
 0x1da   : > { %791 = vmin.xlane.f32.xlu2 %v1647_v26  ;;  %763 = vmin.xlane.f32.xlu0 %v1649_v28 }
 0x209   : > { %v1654_v32 = vpop.xlane.xlu1 %581 }
 0x20a   : > { %vm583_vm2 = vcmp.eq.f32.partialorder %v1530_v29, %v1654_v32 }
 0x20b   : > { %v584_v33 = vsel %vm583_vm2, %v579_v25, inf }
 0x20c   : > { %585 = vmin.xlane.f32.xlu2 %v584_v33  ;;  %v789_v33 = vcvt.s32.f32 %v787_v15 }
 0x211   : > { %v1660_v40 = vpop.xlane.xlu0 %595 }
 0x212   : > { %vm597_vm3 = vcmp.eq.f32.partialorder %v1539_v34, %v1660_v40  ;;  %v607_v34 = vcvt.s32.f32 %v605_v31 }
 0x213   : > { %v598_v43 = vsel %vm597_vm3, %v593_v41, inf }
 0x214   : > { %599 = vmin.xlane.f32.xlu0 %v598_v43 }
 0x215   : > { %v1664_v27 = vpop.xlane.xlu1 %693 }
 0x216   : > { %vm695_vm4 = vcmp.eq.f32.partialorder %v1547_v38, %v1664_v27 }
 0x217   : > { %v696_v29 = vsel %vm695_vm4, %v691_v44, inf }
 0x218   : > { %697 = vmin.xlane.f32.xlu1 %v696_v29 }
 0x21d   : > { %v1670_v48 = vpop.xlane.xlu2 %707  ;;  %v1672_v49 = vpop.xlane.xlu1 %609 }
 0x21e   : > { %vm709_vm5 = vcmp.eq.f32.partialorder %v1560_v45, %v1670_v48  ;;  %vm611_vm6 = vcmp.eq.f32.partialorder %v1562_v46, %v1672_v49 }
 0x21f   : > { %v710_v53 = vsel %vm709_vm5, %v705_v50, inf  ;;  %v612_v38 = vsel %vm611_vm6, %v607_v34, inf }
 0x220   : > { %711 = vmin.xlane.f32.xlu2 %v710_v53  ;;  %613 = vmin.xlane.f32.xlu1 %v612_v38 }
 0x225   : > { %v1680_v56 = vpop.xlane.xlu2 %623 }
 0x226   : > { %vm625_vm7 = vcmp.eq.f32.partialorder %v1571_v51, %v1680_v56  ;;  %v635_v51 = vcvt.s32.f32 %v633_v47 }
 0x227   : > { %v626_v60 = vsel %vm625_vm7, %v621_v58, inf }
 0x228   : > { %627 = vmin.xlane.f32.xlu2 %v626_v60 }
 0x229   : > { %v1684_v45 = vpop.xlane.xlu0 %721 }
 0x22a   : > { %vm723_vm8 = vcmp.eq.f32.partialorder %v1579_v54, %v1684_v45 }
 0x22b   : > { %v724_v46 = vsel %vm723_vm8, %v719_v61, inf }
 0x22c   : > { %725 = vmin.xlane.f32.xlu0 %v724_v46 }
 0x231   : > { %v1691_v2 = vpop.xlane.xlu0 %637  ;;  %v1693_v5 = vpop.xlane.xlu1 %735 }
 0x232   : > { %vm639_vm9 = vcmp.eq.f32.partialorder %v1592_v62, %v1691_v2  ;;  %vm737_vm10 = vcmp.eq.f32.partialorder %v1594_v63, %v1693_v5 }
 0x233   : > { %v640_v54 = vsel %vm639_vm9, %v635_v51, inf  ;;  %v738_v7 = vsel %vm737_vm10, %v733_v6, inf }
 0x234   : > { %641 = vmin.xlane.f32.xlu0 %v640_v54  ;;  %739 = vmin.xlane.f32.xlu1 %v738_v7 }
 0x235   : > { %v1700_v59 = vpop.xlane.xlu2 %749 }
 0x236   : > { %vm751_vm11 = vcmp.eq.f32.partialorder %v1603_v3, %v1700_v59  ;;  %v773_v3 = vand.u32 65535, %v1624_v14  ;;  %v759_v14 = vand.u32 65535, %v1637_v22 }
 0x237   : > { %v752_v10 = vsel %vm751_vm11, %v747_v0, inf }
 0x238   : > { %753 = vmin.xlane.f32.xlu2 %v752_v10  ;;  %v775_v24 = vcvt.s32.f32 %v773_v3  ;;  %v761_v25 = vcvt.s32.f32 %v759_v14 }
 0x239   : > { %v1705_v62 = vpop.xlane.xlu1 %651 }
 0x23a   : > { %vm653_vm12 = vcmp.eq.f32.partialorder %v1611_v8, %v1705_v62  ;;  %v677_v8 = vcvt.s32.f32 %v675_v9 }
 0x23b   : > { %v654_v63 = vsel %vm653_vm12, %v649_v13, inf }
 0x23c   : > { %655 = vmin.xlane.f32.xlu1 %v654_v63 }
 0x23d   : > { %v1709_v16 = vpop.xlane.xlu2 %665 }
 0x23e   : > { %vm667_vm13 = vcmp.eq.f32.partialorder %v1618_v11, %v1709_v16 }
 0x23f   : > { %v668_v17 = vsel %vm667_vm13, %v663_v4, inf }
 0x240   : > { %669 = vmin.xlane.f32.xlu2 %v668_v17 }
 0x245   : > { %v1715_v21 = vpop.xlane.xlu0 %679  ;;  %v1717_v19 = vpop.xlane.xlu1 %777 }
 0x246   : > { %vm681_vm14 = vcmp.eq.f32.partialorder %v1634_v20, %v1715_v21  ;;  %vm779_vm15 = vcmp.eq.f32.partialorder %v1632_v18, %v1717_v19 }
 0x247   : > { %v682_v11 = vsel %vm681_vm14, %v677_v8, inf  ;;  %v780_v30 = vsel %vm779_vm15, %v775_v24, inf }
 0x248   : > { %683 = vmin.xlane.f32.xlu0 %v682_v11  ;;  %781 = vmin.xlane.f32.xlu1 %v780_v30 }
 0x24d   : > { %v1730_v20 = vpop.xlane.xlu2 %791  ;;  %v1732_v18 = vpop.xlane.xlu0 %763 }
 0x24e   : > { %vm765_vm0 = vcmp.eq.f32.partialorder %v1649_v28, %v1732_v18  ;;  %vm793_vm1 = vcmp.eq.f32.partialorder %v1647_v26, %v1730_v20 }
 0x24f   : > { %v766_v22 = vsel %vm765_vm0, %v761_v25, inf  ;;  %v794_v23 = vsel %vm793_vm1, %v789_v33, inf }
 0x250   : > { %1195 = shalt.err (!%p1192_p3)
}
 0x251   : > { %s1264_s6 = smov 128   ;;  %s1265_s7 = smov 8   ;;  %767 = vmin.xlane.f32.xlu0 %v766_v22  ;;  %795 = vmin.xlane.f32.xlu2 %v794_v23  ;;  %v588_v28 = vcvt.f32.s32 %v1654_v32  ;;  %v602_v41 = vcvt.f32.s32 %v1660_v40  ;;  %v700_v34 = vcvt.f32.s32 %v1664_v27  ;;  %v1266_v53 = vmov 0.0  }
 0x252   : > { %1119 = dma.vmem_to_hbm [thread:$0]  (%p1332_p5), %s900_s12, 2048, %s902_s13, %s882_s14, %s1264_s6, %s1264_s6, %s1265_s7   ;;  %v714_v58 = vcvt.f32.s32 %v1670_v48  ;;  %v616_v47 = vcvt.f32.s32 %v1672_v49  ;;  %v630_v54 = vcvt.f32.s32 %v1680_v56  ;;  %v728_v4 = vcvt.f32.s32 %v1684_v45 }
 0x253   : > { %v589_v37 = vshll.u32 %v588_v28, 16  ;;  %v603_v29 = vshll.u32 %v602_v41, 16  ;;  %s1019_s8 = sshll.u32 %s1421_s5, 6  ;;  %v701_v42 = vshll.u32 %v700_v34, 16  ;;  %v742_v24 = vcvt.f32.s32 %v1693_v5  ;;  %s1079_s10 = sshll.u32 %s1315_s19, 6 }
 0x254   : > { %s1758_s9 = scalar_lea.vmem [#allocation4], %s1019_s8  ;;  %v715_v27 = vshll.u32 %v714_v58, 16  ;;  %v617_v6 = vshll.u32 %v616_v47, 16  ;;  %v631_v12 = vshll.u32 %v630_v54, 16  ;;  %v729_v8 = vshll.u32 %v728_v4, 16  ;;  %s915_s13 = scalar_lea.hbm %s1845_s4, %s1079_s10 }
 0x255   : > { %v644_v15 = vcvt.f32.s32 %v1691_v2  ;;  %v743_v25 = vshll.u32 %v742_v24, 16  ;;  %v658_v28 = vcvt.f32.s32 %v1705_v62  ;;  %s916_s19 = sshll.u32 %s1758_s9, 4  ;;  %s918_s14 = sshll.u32 %s915_s13, 4  ;;  %s917_s19 = int_to_ptr.vmem [resolvable:$true] %s916_s19  ;;  %s919_s14 = int_to_ptr.hbm [resolvable:$true] %s918_s14 }
 0x256   : > { %s887_s20 = scalar_lea.sflag [#allocation5], %s1421_s5  ;;  %s1210_s22 = sshra.s32 %s919_s14, 4  ;;  %s1211_s22 = int_to_ptr.hbm [resolvable:$true] %s1210_s22 }
 0x257   : > { %s1212_s23 = scalar_lea.hbm %s1211_s22, 64  ;;  %s1216_s29 = scalar_lea.hbm %s1845_s4, 128 }
 0x258   : > { %p1213_p4 = scmp.ne.s32.totalorder %s1211_s22, %s1212_s23  ;;  %p1217_p9 = scmp.lt.s32.totalorder %s1211_s22, %s1845_s4 }
 0x259   : > { %p1218_p10 = scmp.lt.s32.totalorder %s1216_s29, %s1212_s23 }
 0x25a   : > { %p1214_p7 = pnand %p1213_p4, %p1332_p5 }
 0x25b   : > { %p1219_p11 = por %p1218_p10, %p1217_p9 }
 0x25c   : > { %p1215_p8 = pneg %p1214_p7 }
 0x25e   : > { %p1220_p12 = pnand %p1219_p11, %p1215_p8 }
 0x27f   : > { %v586_v26 = vpop.xlane.xlu2 %585 }
 0x280   : > { %v587_v36 = vcvt.f32.s32 %v586_v26  ;;  %v645_v26 = vshll.u32 %v644_v15, 16 }
 0x282   : > { %v590_v43 = vadd.s32 %v589_v37, %v587_v36 }
 0x284   : > { %vm801_vm2 = vcmp.eq.s32.totalorder %v1423_v57, %v590_v43  ;;  %v659_v43 = vshll.u32 %v658_v28, 16 }
 0x285   : > { %v1054_v32 = vsel %vm801_vm2, 1.0, %v1266_v53 }
 0x287   : > { %v600_v44 = vpop.xlane.xlu0 %599 }
 0x288   : > { %v601_v31 = vcvt.f32.s32 %v600_v44 }
 0x28a   : > { %v604_v35 = vadd.s32 %v603_v29, %v601_v31 }
 0x28b   : > { %v698_v50 = vpop.xlane.xlu1 %697 }
 0x28c   : > { %vm802_vm3 = vcmp.eq.s32.totalorder %v1423_v57, %v604_v35  ;;  %v699_v40 = vcvt.f32.s32 %v698_v50  ;;  %v672_v35 = vcvt.f32.s32 %v1709_v16  ;;  %v784_v16 = vcvt.f32.s32 %v1717_v19 }
 0x28d   : > { %v1055_v38 = vsel %vm802_vm3, 1.0, %v1266_v53 }
 0x28e   : > { %v1081_v39 = vpack.c.bf16 %v1055_v38, %v1054_v32  ;;  %v702_v60 = vadd.s32 %v701_v42, %v699_v40  ;;  %v673_v38 = vshll.u32 %v672_v35, 16  ;;  %v756_v42 = vcvt.f32.s32 %v1700_v59 }
 0x290   : > { %1082 = vst [vmem:[%s1758_s9] sm:$0xff] %v1081_v39   ;;  %vm809_vm4 = vcmp.eq.s32.totalorder %v1423_v57, %v702_v60  ;;  %v686_v39 = vcvt.f32.s32 %v1715_v21  ;;  %v798_v21 = vcvt.f32.s32 %v1730_v20 }
 0x291   : > { %v1062_v48 = vsel %vm809_vm4, 1.0, %v1266_v53 }
 0x293   : > { %v712_v61 = vpop.xlane.xlu2 %711  ;;  %v614_v46 = vpop.xlane.xlu1 %613 }
 0x294   : > { %v713_v52 = vcvt.f32.s32 %v712_v61  ;;  %v615_v51 = vcvt.f32.s32 %v614_v46  ;;  %v687_v61 = vshll.u32 %v686_v39, 16 }
 0x296   : > { %v716_v1 = vadd.s32 %v715_v27, %v713_v52  ;;  %v618_v0 = vadd.s32 %v617_v6, %v615_v51  ;;  %v785_v51 = vshll.u32 %v784_v16, 16  ;;  %v770_v6 = vcvt.f32.s32 %v1732_v18 }
 0x298   : > { %vm810_vm5 = vcmp.eq.s32.totalorder %v1423_v57, %v716_v1  ;;  %vm803_vm6 = vcmp.eq.s32.totalorder %v1423_v57, %v618_v0  ;;  %v757_v1 = vshll.u32 %v756_v42, 16 }
 0x299   : > { %v1063_v7 = vsel %vm810_vm5, 1.0, %v1266_v53  ;;  %v1056_v56 = vsel %vm803_vm6, 1.0, %v1266_v53 }
 0x29a   : > { %v1093_v55 = vpack.c.bf16 %v1063_v7, %v1062_v48 }
 0x29b   : > { %v628_v10 = vpop.xlane.xlu2 %627 }
 0x29c   : > { %1107 = vst [vmem:[%s1758_s9 + $0x20] sm:$0xff] %v1093_v55   ;;  %v629_v49 = vcvt.f32.s32 %v628_v10  ;;  %v799_v10 = vshll.u32 %v798_v21, 16 }
 0x29e   : > { %v632_v13 = vadd.s32 %v631_v12, %v629_v49  ;;  %v771_v12 = vshll.u32 %v770_v6, 16 }
 0x29f   : > { %v726_v63 = vpop.xlane.xlu0 %725 }
 0x2a0   : > { %vm804_vm7 = vcmp.eq.s32.totalorder %v1423_v57, %v632_v13  ;;  %v727_v9 = vcvt.f32.s32 %v726_v63 }
 0x2a1   : > { %v1057_v17 = vsel %vm804_vm7, 1.0, %v1266_v53 }
 0x2a2   : > { %v1084_v3 = vpack.c.bf16 %v1057_v17, %v1056_v56  ;;  %v730_v11 = vadd.s32 %v729_v8, %v727_v9 }
 0x2a4   : > { %1104 = vst [vmem:[%s1758_s9 + $0x8] sm:$0xff] %v1084_v3   ;;  %vm811_vm8 = vcmp.eq.s32.totalorder %v1423_v57, %v730_v11 }
 0x2a5   : > { %v1064_v5 = vsel %vm811_vm8, 1.0, %v1266_v53 }
 0x2a7   : > { %v642_v30 = vpop.xlane.xlu0 %641  ;;  %v740_v14 = vpop.xlane.xlu1 %739 }
 0x2a8   : > { %v741_v45 = vcvt.f32.s32 %v740_v14  ;;  %v643_v33 = vcvt.f32.s32 %v642_v30 }
 0x2aa   : > { %v744_v22 = vadd.s32 %v743_v25, %v741_v45  ;;  %v646_v37 = vadd.s32 %v645_v26, %v643_v33 }
 0x2ab   : > { %v754_v23 = vpop.xlane.xlu2 %753 }
 0x2ac   : > { %vm812_vm9 = vcmp.eq.s32.totalorder %v1423_v57, %v744_v22  ;;  %vm805_vm10 = vcmp.eq.s32.totalorder %v1423_v57, %v646_v37  ;;  %v755_v27 = vcvt.f32.s32 %v754_v23 }
 0x2ad   : > { %v1065_v36 = vsel %vm812_vm9, 1.0, %v1266_v53  ;;  %v1058_v62 = vsel %vm805_vm10, 1.0, %v1266_v53 }
 0x2ae   : > { %v1096_v41 = vpack.c.bf16 %v1065_v36, %v1064_v5  ;;  %v758_v19 = vadd.s32 %v757_v1, %v755_v27 }
 0x2af   : > { %v656_v2 = vpop.xlane.xlu1 %655 }
 0x2b0   : > { %1108 = vst [vmem:[%s1758_s9 + $0x28] sm:$0xff] %v1096_v41   ;;  %v657_v44 = vcvt.f32.s32 %v656_v2  ;;  %vm813_vm14 = vcmp.eq.s32.totalorder %v1423_v57, %v758_v19 }
 0x2b1   : > { %v1066_v63 = vsel %vm813_vm14, 1.0, %v1266_v53 }
 0x2b2   : > { %v660_v29 = vadd.s32 %v659_v43, %v657_v44 }
 0x2b3   : > { %v670_v31 = vpop.xlane.xlu2 %669 }
 0x2b4   : > { %vm806_vm11 = vcmp.eq.s32.totalorder %v1423_v57, %v660_v29  ;;  %v671_v32 = vcvt.f32.s32 %v670_v31 }
 0x2b5   : > { %v1059_v50 = vsel %vm806_vm11, 1.0, %v1266_v53 }
 0x2b6   : > { %v1087_v34 = vpack.c.bf16 %v1059_v50, %v1058_v62  ;;  %v674_v40 = vadd.s32 %v673_v38, %v671_v32 }
 0x2b8   : > { %1105 = vst [vmem:[%s1758_s9 + $0x10] sm:$0xff] %v1087_v34   ;;  %vm807_vm12 = vcmp.eq.s32.totalorder %v1423_v57, %v674_v40 }
 0x2b9   : > { %v1060_v59 = vsel %vm807_vm12, 1.0, %v1266_v53 }
 0x2bb   : > { %v684_v58 = vpop.xlane.xlu0 %683  ;;  %v782_v60 = vpop.xlane.xlu1 %781 }
 0x2bc   : > { %v685_v46 = vcvt.f32.s32 %v684_v58  ;;  %v783_v52 = vcvt.f32.s32 %v782_v60 }
 0x2be   : > { %v688_v47 = vadd.s32 %v687_v61, %v685_v46  ;;  %v786_v7 = vadd.s32 %v785_v51, %v783_v52 }
 0x2c0   : > { %vm808_vm13 = vcmp.eq.s32.totalorder %v1423_v57, %v688_v47  ;;  %vm815_vm15 = vcmp.eq.s32.totalorder %v1423_v57, %v786_v7 }
 0x2c1   : > { %v1061_v54 = vsel %vm808_vm13, 1.0, %v1266_v53  ;;  %v1068_v4 = vsel %vm815_vm15, 1.0, %v1266_v53 }
 0x2c2   : > { %v1090_v48 = vpack.c.bf16 %v1061_v54, %v1060_v59 }
 0x2c4   : > { %v768_v55 = vpop.xlane.xlu0 %767  ;;  %v796_v0 = vpop.xlane.xlu2 %795  ;;  %1106 = vst [vmem:[%s1758_s9 + $0x18] sm:$0xff] %v1090_v48  }
 0x2c5   : > { %v769_v49 = vcvt.f32.s32 %v768_v55  ;;  %v797_v20 = vcvt.f32.s32 %v796_v0 }
 0x2c7   : > { %v772_v18 = vadd.s32 %v771_v12, %v769_v49  ;;  %v800_v13 = vadd.s32 %v799_v10, %v797_v20 }
 0x2c9   : > { %vm814_vm0 = vcmp.eq.s32.totalorder %v1423_v57, %v772_v18  ;;  %vm816_vm1 = vcmp.eq.s32.totalorder %v1423_v57, %v800_v13 }
 0x2ca   : > { %v1067_v56 = vsel %vm814_vm0, 1.0, %v1266_v53  ;;  %v1069_v17 = vsel %vm816_vm1, 1.0, %v1266_v53 }
 0x2cb   : > { %v1099_v3 = vpack.c.bf16 %v1067_v56, %v1066_v63  ;;  %v1102_v9 = vpack.c.bf16 %v1069_v17, %v1068_v4 }
 0x2cd   : > { %1109 = vst [vmem:[%s1758_s9 + $0x30] sm:$0xff] %v1099_v3  }
 0x2ce   : > { %1110 = vst [vmem:[%s1758_s9 + $0x38] sm:$0xff] %v1102_v9  }
 0x2cf   : > { %1223 = shalt.err (!%p1220_p12)
}
 0x2d0   : > { %s1267_s5 = smov 64   ;;  %s1268_s7 = smov 4  }
 0x2d1   : > { %1120 = dma.vmem_to_hbm [thread:$0]  (%p1332_p5), %s917_s19, 1024, %s919_s14, %s887_s20, %s1267_s5, %s1267_s5, %s1268_s7  }
 0x2d2 PF: > { %p1130_p13 = scmp.ge.s32.totalorder %s1262_s18, 2  ;;  %s933_s8 = sand.u32 1, %s1250_s15  }
 0x2d3   : > { %s934_s9 = scalar_lea.sflag [#allocation3], %s933_s8 }
 0x2d4   : > { %p1124_p0 = pnand %p1130_p13, %p1336_p6 }
 0x2d6   : > { %p1125_p1 = pneg %p1124_p0 }
 0x2d8   : > { %1241 = dma.done.wait (%p1125_p1), %s934_s9, 2048  }
 0x2d9   : > { %1243 = vsyncadd (%p1125_p1), %s934_s9, 4294965248  ;;  %s944_s10 = scalar_lea.sflag [#allocation5], %s933_s8 }
 0x2da   : > { %1245 = dma.done.wait (%p1125_p1), %s944_s10, 1024  }
 0x2db   : > { %1247 = vsyncadd (%p1125_p1), %s944_s10, 4294966272  ;;  %p18_p5 = scmp.ge.s32.totalorder %s1319_s21, 4   ;;  %s1848_s15 = smov %s1254_s16 }
 0x2dc   : > { %s1849_s16 = smov %s1258_s17  ;;  %s1850_s17 = smov %s1330_s24 }
 0x2dd   : > { %s1851_s18 = smov %s1319_s21  ;;  %20 = sbr.rel (!%p18_p5) target bundleno = 5 (0x5), region = 84 }
 0x2e2   :  { %950 = vsyncpa [#allocation3], 1 }
 0x2e3   :  { %952 = vsyncpa [#allocation3 + $0x1], 1 }
 0x2e4   :  { %953 = vsyncpa [#allocation5], 1 }
 0x2e5   :  { %955 = vsyncpa [#allocation5 + $0x1], 1 }

</bundles_post_ra>
